<compile_context>
chip_gen: v6e
topology: v6e:2x2x1
jax: 0.10.0
libtpu: 0.0.40
codegen_flags: <defaults>
</compile_context>

<pallas_src>
import functools

import jax
import jax.numpy as jnp
from jax import lax
from jax.experimental import pallas as pl
from jax.experimental.pallas import tpu as pltpu

_LANES = 128
_SUBLANES = 8
_TILE = _LANES * _SUBLANES  # 1024 f32 = one full (8,128) vreg tile
_VMEM = pl.BlockSpec(memory_space=pltpu.MemorySpace.VMEM)
_SMEM = pl.BlockSpec(memory_space=pltpu.MemorySpace.SMEM)


def _padded_geometry(n):
    """Round length n up to a multiple of 1024 (= 8x128) so the padded buffer is
    whole f32 (8,128) tiles -> unmasked vst on v5e/v6e/v7x."""
    n_pad = max(_TILE, ((n + _TILE - 1) // _TILE) * _TILE)
    return n_pad // _LANES, _LANES, n_pad


def _flat_index(rows, lanes):
    row_idx = lax.broadcasted_iota(jnp.int32, (rows, lanes), 0)
    lane_idx = lax.broadcasted_iota(jnp.int32, (rows, lanes), 1)
    return row_idx * lanes + lane_idx


# --------------------------------------------------------------------------
# Kernels
# --------------------------------------------------------------------------
def _extended_kernel(base_ref, out_ref, *, n_eigen, sig_extrap):
    # flat_idx <  n_eigen : precomputed sigmoid(filter_weights) (padded with 0)
    # flat_idx >= n_eigen : sigmoid(extrapolation_param) * exp(-(flat_idx - n_eigen))
    # Tail exp computed in-kernel (EUP slot); clamp the exponent at 0 so the
    # discarded true-branch lanes never overflow to inf for large n_eigen.
    rows, lanes = out_ref.shape
    flat_idx = _flat_index(rows, lanes)
    tail_exp = jnp.exp(-(jnp.maximum(flat_idx - n_eigen, 0)).astype(jnp.float32))
    out_ref[...] = jnp.where(flat_idx < n_eigen,
                             base_ref[...],
                             sig_extrap * tail_exp)


def _polynomial_kernel(coeff_ref, eig_ref, out_ref, *, poly_order, n_valid):
    # normalized = (eig - min) / (max - min + 1e-8) with min/max over valid lanes only
    # Horner:  result = ((c_P * x + c_{P-1}) * x + ...) * x + c_0 ; out = sigmoid(result)
    rows, lanes = eig_ref.shape
    flat_idx = _flat_index(rows, lanes)
    valid = flat_idx < n_valid

    eig = eig_ref[...]
    emin = jnp.min(jnp.where(valid, eig, jnp.inf))
    emax = jnp.max(jnp.where(valid, eig, -jnp.inf))
    norm = (eig - emin) / (emax - emin + 1e-8)

    result = jnp.full_like(norm, coeff_ref[poly_order])
    for k in range(poly_order - 1, -1, -1):   # static unroll, 1 mul + 1 add / degree
        result = result * norm + coeff_ref[k]
    out_ref[...] = jax.nn.sigmoid(result)


# --------------------------------------------------------------------------
# Module wrapper (deterministic parameter init, mirrors nn.Module.__init__)
# --------------------------------------------------------------------------
class FullSpectrumFilterPallas:
    def __init__(self, n_eigen, mode="truncated", full_size=None):
        self.n_eigen = n_eigen
        self.mode = mode
        self.full_size = full_size or n_eigen

        if mode in ("truncated", "extended"):
            i = jnp.arange(n_eigen, dtype=jnp.float32)
            # _initialize_weights: w[i] = 0.8 * exp(-2*i/n_eigen)
            self.filter_weights = 0.8 * jnp.exp(-2.0 * i / n_eigen)

        if mode == "truncated":
            # Pure function of a frozen parameter: compute once (plain JAX — no
            # Mosaic compile for a one-time tiny sigmoid), cache, return per call.
            self._activated = jax.nn.sigmoid(self.filter_weights)

        if mode == "extended":
            self.extrapolation_param = jnp.float32(0.1)
            # Frozen-parameter constants hoisted out of the forward path.
            self._base = jax.nn.sigmoid(self.filter_weights)
            self._sig_extrap = float(jax.nn.sigmoid(self.extrapolation_param))
            # Output depends only on eigenvals.shape[0] -> cache per extra_len.
            self._extended_cache = {}

        if mode == "polynomial":
            self.poly_order = min(8, n_eigen // 4)
            coeffs = [1.0] + [0.3 * (-1.0) ** i / (i + 1)
                              for i in range(1, self.poly_order + 1)]
            self.poly_coeffs = jnp.array(coeffs, dtype=jnp.float32)
            self._poly_fn_cache = {}   # n_vals -> jitted forward

    # ---------------- extended (one pallas_call per unique output length) -----
    def _extended_forward(self, total):
        rows, lanes, total_pad = _padded_geometry(total)
        base_pad = jnp.zeros((total_pad,), jnp.float32).at[:self.n_eigen].set(self._base)
        kern = functools.partial(_extended_kernel,
                                 n_eigen=self.n_eigen,
                                 sig_extrap=self._sig_extrap)
        out = pl.pallas_call(
            kern,
            out_shape=jax.ShapeDtypeStruct((rows, lanes), jnp.float32),
            in_specs=[_VMEM],
            out_specs=_VMEM,
        )(base_pad.reshape(rows, lanes))
        return out.reshape(total_pad)[:total]

    # ---------------- polynomial (jitted per input length) --------------------
    def _make_poly_fn(self, n_vals):
        rows, lanes, n_pad = _padded_geometry(n_vals)
        kern = functools.partial(_polynomial_kernel,
                                 poly_order=self.poly_order,
                                 n_valid=n_vals)
        pcall = pl.pallas_call(
            kern,
            out_shape=jax.ShapeDtypeStruct((rows, lanes), jnp.float32),
            in_specs=[_SMEM, _VMEM],
            out_specs=_VMEM,
        )
        coeffs = self.poly_coeffs

        def fwd(eigenvals):
            eig_pad = jnp.zeros((n_pad,), jnp.float32).at[:n_vals].set(eigenvals)
            out = pcall(coeffs, eig_pad.reshape(rows, lanes))
            return out.reshape(n_pad)[:n_vals]

        # jit so pad/reshape/slice fuse with the custom call (single dispatch).
        return jax.jit(fwd)

    # ---------------- forward -------------------------------------------------
    def __call__(self, eigenvals):
        eigenvals = jnp.asarray(eigenvals, jnp.float32)
        n_vals = eigenvals.shape[0]

        if self.mode == "truncated":
            return self._activated

        elif self.mode == "extended":
            extra_len = max(0, n_vals - self.n_eigen)
            if extra_len == 0:
                return self._base
            total = self.n_eigen + extra_len
            cached = self._extended_cache.get(extra_len)
            if cached is None:
                cached = self._extended_forward(total)
                self._extended_cache[extra_len] = cached
            return cached

        elif self.mode == "polynomial":
            fn = self._poly_fn_cache.get(n_vals)
            if fn is None:
                fn = self._make_poly_fn(n_vals)
                self._poly_fn_cache[n_vals] = fn
            return fn(eigenvals)

        raise ValueError(f"unknown mode {self.mode}")


# --------------------------------------------------------------------------
# Pure-JAX reference (mirrors the PyTorch forward exactly) for a sanity check
# --------------------------------------------------------------------------
def _reference(filt, eigenvals):
    if filt.mode == "truncated":
        return jax.nn.sigmoid(filt.filter_weights)
    if filt.mode == "extended":
        base = jax.nn.sigmoid(filt.filter_weights)
        if eigenvals.shape[0] > filt.n_eigen:
            extra_len = eigenvals.shape[0] - filt.n_eigen
            extra = (jax.nn.sigmoid(filt.extrapolation_param)
                     * jnp.exp(-jnp.arange(extra_len, dtype=jnp.float32)))
            return jnp.concatenate([base, extra])
        return base
    if filt.mode == "polynomial":
        norm = (eigenvals - eigenvals.min()) / (eigenvals.max() - eigenvals.min() + 1e-8)
        result = filt.poly_coeffs[0] * jnp.ones_like(norm)
        x_power = norm
        for k in range(1, filt.poly_order + 1):
            result = result + filt.poly_coeffs[k] * x_power
            x_power = x_power * norm
        return jax.nn.sigmoid(result)


if __name__ == "__main__":
    key = jax.random.PRNGKey(0)
    n_eigen = 64
    n_vals = 128  # > n_eigen so the 'extended' branch exercises extrapolation
    eigenvals = jax.random.uniform(key, (n_vals,), jnp.float32, 0.0, 2.0)

    ok = True
    for mode in ("truncated", "extended", "polynomial"):
        filt = FullSpectrumFilterPallas(n_eigen, mode=mode, full_size=n_vals)
        out = filt(eigenvals)
        out = jax.block_until_ready(out)
        ref = _reference(filt, eigenvals)
        if out.shape != ref.shape or not jnp.allclose(out, ref, atol=1e-5, rtol=1e-5):
            ok = False
            print(f"mode={mode}: MISMATCH  max_err={jnp.max(jnp.abs(out - ref))}")

    if ok:
        print("KERNEL_OK")
</pallas_src>

<mosaic_0001>
module attributes {stable_mosaic.version = 11 : i64} {
  func.func @_extended_kernel(%arg0: memref<8x128xf32, #tpu.memory_space<vmem>>, %arg1: memref<8x128xf32, #tpu.memory_space<vmem>>) attributes {dimension_semantics = [], scalar_prefetch = 0 : i64, scratch_operands = 0 : i64, tpu.core_type = #tpu.core_type<tc>} {
    %0 = tpu.iota {dimensions = array<i32: 0>} : vector<8x128xi32>
    %1 = tpu.iota {dimensions = array<i32: 1>} : vector<8x128xi32>
    %c128_i32 = arith.constant 128 : i32
    %2 = vector.broadcast %c128_i32 : i32 to vector<8x128xi32>
    %3 = arith.muli %0, %2 : vector<8x128xi32>
    %4 = arith.addi %3, %1 : vector<8x128xi32>
    %c64_i32 = arith.constant 64 : i32
    %5 = vector.broadcast %c64_i32 : i32 to vector<8x128xi32>
    %6 = arith.subi %4, %5 : vector<8x128xi32>
    %c0_i32 = arith.constant 0 : i32
    %7 = vector.broadcast %c0_i32 : i32 to vector<8x128xi32>
    %8 = arith.maxsi %6, %7 : vector<8x128xi32>
    %9 = arith.sitofp %8 : vector<8x128xi32> to vector<8x128xf32>
    %cst = arith.constant 0.000000e+00 : f32
    %10 = vector.broadcast %cst : f32 to vector<8x128xf32>
    %11 = arith.subf %10, %9 : vector<8x128xf32>
    %12 = math.exp %11 : vector<8x128xf32>
    %c64_i32_0 = arith.constant 64 : i32
    %13 = vector.broadcast %c64_i32_0 : i32 to vector<8x128xi32>
    %14 = arith.cmpi slt, %4, %13 : vector<8x128xi32>
    %c0 = arith.constant 0 : index
    %c0_1 = arith.constant 0 : index
    %15 = vector.load %arg0[%c0, %c0_1] : memref<8x128xf32, #tpu.memory_space<vmem>>, vector<8x128xf32>
    %cst_2 = arith.constant 0.524979174 : f32
    %16 = vector.broadcast %cst_2 : f32 to vector<8x128xf32>
    %17 = arith.mulf %16, %12 : vector<8x128xf32>
    %18 = arith.select %14, %15, %17 : vector<8x128xi1>, vector<8x128xf32>
    %c0_3 = arith.constant 0 : index
    %c0_4 = arith.constant 0 : index
    %19 = vector.load %arg1[%c0_3, %c0_4] : memref<8x128xf32, #tpu.memory_space<vmem>>, vector<8x128xf32>
    tpu.vector_store %arg1[%c0_3, %c0_4], %18 {strides = array<i32>} : memref<8x128xf32, #tpu.memory_space<vmem>>, vector<8x128xf32>,
    return
  }
}

</mosaic_0001>

<bundles_post_ra>
// kernel: tpu_custom_call.1
= control target key start
LH: loop header
LB: loop body
LE: loop exit
PB: predicated region body
PF: predicated region fallthrough
CT: control target
= control target key end

     0   :  { %6 = vsyncpa [#allocation3], 0  ;;  %s123_s0 = inlined_call_operand.hbm [shape: f32[8,128], index: 0, kind: input, shape index: {}]   ;;  %s124_s1 = inlined_call_operand.hbm [shape: f32[8,128], index: 1, kind: output, shape index: {}]  }
   0x1   :  { %7 = vsyncpa [#allocation4], 0  ;;  %s105_s6 = smov [#allocation2]  }
   0x2   :  { %s14_s7 = sshll.u32 %s105_s6, 4  ;;  %s15_s7 = int_to_ptr.vmem [resolvable:$true] %s14_s7 }
   0x3   :  { %s69_s8 = scalar_lea.vmem %s15_s7, 128  ;;  %p74_p1 = scmp.lt.s32.totalorder %s15_s7, %s15_s7 }
   0x4   :  { %p70_p0 = scmp.ne.s32.totalorder %s15_s7, %s69_s8  ;;  %p75_p2 = scmp.lt.s32.totalorder %s69_s8, %s69_s8 }
   0x6   :  { %p76_p3 = por %p75_p2, %p74_p1 }
   0x8   :  { %p77_p4 = pnand %p76_p3, %p70_p0 }
   0xa   :  { %80 = shalt.err (!%p77_p4)
}
   0xb   :  { %17 = dma.hbm_to_vmem [thread:$0]  %s123_s0, 128, %s15_s7, [#allocation3]  }
   0xc   :  { %101 = dma.done.wait [#allocation3], 128  }
   0xd   :  { %102 = vsyncadd [#allocation3], 4294967168  ;;  %v21_v0 = vlaneseq  ;;  %s106_s11 = smov [#allocation5]   ;;  %v35_v11 = vld [vmem:[#allocation2] sm:$0xff] }
   0xe   :  { %s45_s12 = sshll.u32 %s106_s11, 4  ;;  %s46_s12 = int_to_ptr.vmem [resolvable:$true] %s45_s12 }
   0xf   :  { %v22_v1 = vshrl.u32 %v21_v0, 7  ;;  %v24_v2 = vand.u32 127, %v21_v0  ;;  %s81_s0 = scalar_lea.vmem %s46_s12, 128  ;;  %p86_p6 = scmp.lt.s32.totalorder %s46_s12, %s46_s12 }
  0x10   :  { %p82_p5 = scmp.ne.s32.totalorder %s46_s12, %s81_s0  ;;  %p87_p7 = scmp.lt.s32.totalorder %s81_s0, %s81_s0 }
  0x11   :  { %v25_v3 = vmul.u32 128, %v22_v1 }
  0x12   :  { %p88_p8 = por %p87_p7, %p86_p6 }
  0x13   :  { %v26_v4 = vadd.s32 %v25_v3, %v24_v2 }
  0x14   :  { %p89_p9 = pnand %p88_p8, %p82_p5 }
  0x15   :  { %v54_v5 = vadd.s32 4294967232, %v26_v4  ;;  %vm34_vm1 = vcmp.lt.s32.totalorder %v26_v4, 64 }
  0x17   :  { %vm28_vm0 = vcmp.gt.s32.totalorder %v54_v5, 0  ;;  %v55_v6 = vcvt.s32.f32 %v54_v5 }
  0x19   :  { %v56_v7 = vsel %vm28_vm0, %v55_v6, 0.0 }
  0x1a   :  { %v31_v8 = vsub.f32 0.0, %v56_v7 }
  0x1c   :  { %v32_v9 = vmul.f32 1.442695, %v31_v8 }
  0x1e   :  { %59 = vpow2.f32 %v32_v9 }
  0x2b   :  { %v60_v10 = vpop.eup %59 }
  0x2c   :  { %v36_v12 = vmul.f32 0.5249792, %v60_v10 }
  0x2e   :  { %v37_v13 = vsel %vm34_vm1, %v35_v11, %v36_v12 }
  0x2f   :  { %38 = vst [vmem:[#allocation5] sm:$0xff] %v37_v13 }
  0x30   :  { %92 = shalt.err (!%p89_p9)
}
  0x31   :  { %48 = dma.vmem_to_hbm [thread:$0]  %s46_s12, 128, %s124_s1, [#allocation4]  }
  0x32   :  { %103 = dma.done.wait [#allocation4], 128  }
  0x33   :  { %104 = vsyncadd [#allocation4], 4294967168 }
  0x34   :  { %52 = vsyncpa [#allocation3], 1 }
  0x35   :  { %53 = vsyncpa [#allocation4], 1 }

</bundles_post_ra>
